<compile_context>
chip_gen: v7x
topology: tpu7x:2x2x1
jax: 0.10.0
libtpu: 0.0.40
codegen_flags: <defaults>
</compile_context>

<pallas_src>
import jax
import jax.numpy as jnp
import numpy as np
from jax import lax
from jax.experimental import pallas as pl
from jax.experimental.pallas import tpu as pltpu


def embed_vector_kernel(
    xg_ref,      # (T*B, 8H) f32  pre-projected gate inputs, interleaved
                 #                [i_f,i_b,f_f,f_b,g_f,g_b,o_f,o_b], bwd half
                 #                already time-reversed host-side
    whh_ref,     # (2H, 8H)  bf16 block-diagonal fwd/bwd hidden->gate weights
    w1_ref,      # (2H, 2H)  bf16 Linear1^T with BatchNorm(eval) folded in
    w2_ref,      # (2H, L)   bf16 Linear2^T
    bias_ref,    # (1, 2H+L) f32  [b1_folded | b2]
    scores_ref,  # (B, L)    f32  output
    h_all_ref,   # (T*B, 2H) f32  scratch: [h_fwd | h_bwd] per original time
):
    B, L = scores_ref.shape
    H2 = whh_ref.shape[0]          # 2H
    H = H2 // 2
    TB = xg_ref.shape[0]
    T = TB // B

    whh = whh_ref[...]             # hold the (2H, 8H) bf16 weights in vregs

    # ---- Fused fwd/bwd recurrence: fused step s advances forward time s and
    #      backward (original) time T-1-s together in one (B, 2H) state tile.
    h_cat = jnp.zeros((B, H2), jnp.float32)
    c_cat = jnp.zeros((B, H2), jnp.float32)
    for s in range(T):             # T is small & static -> full unroll
        sb = T - 1 - s
        gates = xg_ref[s * B:(s + 1) * B, :] + jnp.dot(
            h_cat.astype(jnp.bfloat16), whh,
            preferred_element_type=jnp.float32)               # (B, 8H) f32
        # full-tensor activations, then contiguous 2H-wide slices
        sig = jax.nn.sigmoid(gates)
        th = jnp.tanh(gates)
        i_g = sig[:, 0 * H2:1 * H2]
        f_g = sig[:, 1 * H2:2 * H2]
        g_g = th[:, 2 * H2:3 * H2]
        o_g = sig[:, 3 * H2:4 * H2]
        c_cat = f_g * c_cat + i_g * g_g
        h_cat = o_g * jnp.tanh(c_cat)
        # store per original time: fwd half at time s, bwd half at time T-1-s
        h_all_ref[s * B:(s + 1) * B, 0:H] = h_cat[:, 0:H]
        h_all_ref[sb * B:(sb + 1) * B, H:H2] = h_cat[:, H:H2]

    # ---- Head (de-fused, batched over the whole (T*B, 2H) slab):
    #      Linear(2H,2H) + BN(eval) [folded] -> Tanh -> Dropout(id)
    #      -> time-mean (folded before Linear2, which is linear) -> Linear2.
    z = jnp.dot(h_all_ref[...].astype(jnp.bfloat16), w1_ref[...],
                preferred_element_type=jnp.float32) + bias_ref[:, 0:H2]
    a = jnp.tanh(z)                                            # (T*B, 2H) f32

    acc = a[0:B, :]
    for t in range(1, T):
        acc = acc + a[t * B:(t + 1) * B, :]
    mean_a = (acc * jnp.float32(1.0 / T)).astype(jnp.bfloat16)  # (B, 2H)

    mean_tags = jnp.dot(mean_a, w2_ref[...],
                        preferred_element_type=jnp.float32) + bias_ref[:, H2:H2 + L]

    # F.normalize(mean_tags, dim=1): rsqrt(max(sumsq, eps^2)) == 1/max(||x||,eps)
    sumsq = jnp.sum(mean_tags * mean_tags, axis=1, keepdims=True)
    scores_ref[...] = mean_tags * lax.rsqrt(
        jnp.maximum(sumsq, jnp.float32(1e-24)))


def prepare_kernel_params(p):
    """Fold / repack raw PyTorch-layout params into kernel operands."""
    H = p["w_hh_f"].shape[1]

    # Pre-project the embedding table through the input->gate weights (both
    # directions), folding the gate biases in: E' is (words_num, 8H), columns
    # [fwd(i,f,g,o) | bwd(i,f,g,o)].
    wih_both = jnp.concatenate([p["w_ih_f"].T, p["w_ih_b"].T], axis=1)
    bih_both = jnp.concatenate(
        [p["b_ih_f"] + p["b_hh_f"], p["b_ih_b"] + p["b_hh_b"]])
    table = p["embed_w"] @ wih_both + bih_both                  # (V, 8H) f32

    # Block-diagonal, gate-interleaved hidden->gate weights: rows 0:H act on
    # h_fwd, rows H:2H on h_bwd; column blocks ordered
    # [i_f,i_b,f_f,f_b,g_f,g_b,o_f,o_b].
    whh_f_blk = p["w_hh_f"].T.reshape(H, 4, H)
    whh_b_blk = p["w_hh_b"].T.reshape(H, 4, H)
    zeros = jnp.zeros_like(whh_f_blk)
    top = jnp.stack([whh_f_blk, zeros], axis=2).reshape(H, 8 * H)
    bot = jnp.stack([zeros, whh_b_blk], axis=2).reshape(H, 8 * H)
    whh_fused = jnp.concatenate([top, bot], axis=0).astype(jnp.bfloat16)

    # Fold BatchNorm1d (eval, running stats) into Linear1.
    scale = p["gamma"] / jnp.sqrt(p["run_var"] + p["eps"])
    w1_folded = (p["w1"].T * scale[None, :]).astype(jnp.bfloat16)   # (2H, 2H)
    b1_folded = p["b1"] * scale + (p["beta"] - p["run_mean"] * scale)

    w2t = p["w2"].T.astype(jnp.bfloat16)                            # (2H, L)
    bias_packed = jnp.concatenate([b1_folded, p["b2"]]).reshape(1, -1)

    return dict(table=table, whh=whh_fused, w1=w1_folded, w2=w2t,
                bias=bias_packed.astype(jnp.float32), H=H)


def embed_vector_forward(text, kp):
    T, B = text.shape
    H = kp["H"]
    L = kp["w2"].shape[1]

    # nn.Embedding lookup against the pre-projected table (XLA gather glue),
    # then interleave fwd / time-reversed-bwd gate blocks so the kernel reads
    # one contiguous (B, 8H) row block per fused step.
    proj = jnp.take(kp["table"], text, axis=0)                  # (T, B, 8H)
    proj_f = proj[..., :4 * H].reshape(T, B, 4, H)
    proj_b = proj[..., 4 * H:][::-1].reshape(T, B, 4, H)        # time-reversed
    xg = jnp.stack([proj_f, proj_b], axis=3).reshape(T * B, 8 * H)

    vmem = pl.BlockSpec(memory_space=pltpu.MemorySpace.VMEM)
    return pl.pallas_call(
        embed_vector_kernel,
        out_shape=jax.ShapeDtypeStruct((B, L), jnp.float32),
        in_specs=[vmem] * 5,
        out_specs=vmem,
        scratch_shapes=[pltpu.VMEM((T * B, 2 * H), jnp.float32)],
    )(xg, kp["whh"], kp["w1"], kp["w2"], kp["bias"])


def init_params(key, words_num, words_dim, hidden, label):
    """Raw PyTorch-layout parameters (used by both ref and kernel prep)."""
    D, H, L = words_dim, hidden, label
    ks = jax.random.split(key, 17)
    u = lambda k, shape, s: jax.random.uniform(k, shape, jnp.float32, -s, s)
    lstm_bound = 1.0 / np.sqrt(H)
    bnd1 = 1.0 / np.sqrt(2 * H)
    bnd2 = 1.0 / np.sqrt(2 * H)

    p = {
        "embed_w": jax.random.normal(ks[0], (words_num, D), jnp.float32),
        "w_ih_f": u(ks[1], (4 * H, D), lstm_bound),
        "w_hh_f": u(ks[2], (4 * H, H), lstm_bound),
        "b_ih_f": u(ks[3], (4 * H,), lstm_bound),
        "b_hh_f": u(ks[4], (4 * H,), lstm_bound),
        "w_ih_b": u(ks[5], (4 * H, D), lstm_bound),
        "w_hh_b": u(ks[6], (4 * H, H), lstm_bound),
        "b_ih_b": u(ks[7], (4 * H,), lstm_bound),
        "b_hh_b": u(ks[8], (4 * H,), lstm_bound),
        "w1": u(ks[9], (2 * H, 2 * H), bnd1),
        "b1": u(ks[10], (2 * H,), bnd1),
        "gamma": jax.random.uniform(ks[11], (2 * H,), jnp.float32, 0.5, 1.5),
        "beta": 0.1 * jax.random.normal(ks[12], (2 * H,), jnp.float32),
        "run_mean": 0.1 * jax.random.normal(ks[13], (2 * H,), jnp.float32),
        "run_var": jax.random.uniform(ks[14], (2 * H,), jnp.float32, 0.5, 1.5),
        "eps": 1e-5,
        "w2": u(ks[15], (L, 2 * H), bnd2),
        "b2": u(ks[16], (L,), bnd2),
    }
    return p


def ref_forward(text, p):
    """Pure-JAX f32 reference matching the PyTorch forward (eval mode)."""
    x = jnp.take(p["embed_w"], text, axis=0)                    # (T, B, D)
    T, B, _ = x.shape
    H = p["w_hh_f"].shape[1]

    def run_dir(xs, w_ih, w_hh, b_ih, b_hh):
        def step(carry, xt):
            h, c = carry
            gates = xt @ w_ih.T + b_ih + h @ w_hh.T + b_hh
            i = jax.nn.sigmoid(gates[:, 0:H])
            f = jax.nn.sigmoid(gates[:, H:2 * H])
            g = jnp.tanh(gates[:, 2 * H:3 * H])
            o = jax.nn.sigmoid(gates[:, 3 * H:4 * H])
            c = f * c + i * g
            h = o * jnp.tanh(c)
            return (h, c), h
        init = (jnp.zeros((B, H), jnp.float32), jnp.zeros((B, H), jnp.float32))
        _, hs = lax.scan(step, init, xs)
        return hs

    out_f = run_dir(x, p["w_ih_f"], p["w_hh_f"], p["b_ih_f"], p["b_hh_f"])
    out_b = run_dir(x[::-1], p["w_ih_b"], p["w_hh_b"],
                    p["b_ih_b"], p["b_hh_b"])[::-1]
    outputs = jnp.concatenate([out_f, out_b], axis=-1).reshape(T * B, 2 * H)

    z = outputs @ p["w1"].T + p["b1"]
    scale = p["gamma"] / jnp.sqrt(p["run_var"] + p["eps"])
    z = (z - p["run_mean"]) * scale + p["beta"]
    a = jnp.tanh(z)
    tags = (a @ p["w2"].T + p["b2"]).reshape(T, B, -1)
    mean_tags = tags.mean(axis=0)
    norm = jnp.maximum(
        jnp.sqrt(jnp.sum(mean_tags * mean_tags, axis=1, keepdims=True)), 1e-12)
    return mean_tags / norm


if __name__ == "__main__":
    # config: words_num=100, words_dim=32, hidden_size=32, num_layer=1,
    #         label=16, qa_mode='LSTM'; x.text is (num_word=8, batch=8).
    T, B = 8, 8
    words_num, words_dim = 100, 32
    hidden, label = 32, 16

    key = jax.random.PRNGKey(0)
    k_text, k_params = jax.random.split(key)
    text = jax.random.randint(k_text, (T, B), 0, words_num, dtype=jnp.int32)
    params = init_params(k_params, words_num, words_dim, hidden, label)
    kparams = prepare_kernel_params(params)

    scores = jax.block_until_ready(embed_vector_forward(text, kparams))
    ref = jax.block_until_ready(ref_forward(text, params))

    assert scores.shape == (B, label)
    assert bool(jnp.all(jnp.isfinite(scores)))
    np.testing.assert_allclose(np.asarray(scores), np.asarray(ref),
                               rtol=1e-2, atol=1e-2)
    print("KERNEL_OK")
</pallas_src>

<mosaic_0001>
module attributes {stable_mosaic.version = 11 : i64} {
  func.func @embed_vector_kernel(%arg0: memref<64x256xf32, #tpu.memory_space<vmem>>, %arg1: memref<64x256xbf16, #tpu.memory_space<vmem>>, %arg2: memref<64x64xbf16, #tpu.memory_space<vmem>>, %arg3: memref<64x16xbf16, #tpu.memory_space<vmem>>, %arg4: memref<1x80xf32, #tpu.memory_space<vmem>>, %arg5: memref<8x16xf32, #tpu.memory_space<vmem>>, %arg6: memref<64x64xf32, #tpu.memory_space<vmem>>) attributes {dimension_semantics = [], scalar_prefetch = 0 : i64, scratch_operands = 1 : i64, tpu.core_type = #tpu.core_type<tc>} {
    %c0 = arith.constant 0 : index
    %c0_0 = arith.constant 0 : index
    %0 = vector.load %arg1[%c0, %c0_0] : memref<64x256xbf16, #tpu.memory_space<vmem>>, vector<64x256xbf16>
    %cst = arith.constant 0.000000e+00 : f32
    %1 = vector.broadcast %cst : f32 to vector<8x64xf32>
    %cst_1 = arith.constant 0.000000e+00 : f32
    %2 = vector.broadcast %cst_1 : f32 to vector<8x64xf32>
    %c0_2 = arith.constant 0 : index
    %c0_3 = arith.constant 0 : index
    %3 = vector.load %arg0[%c0_2, %c0_3] : memref<64x256xf32, #tpu.memory_space<vmem>>, vector<8x256xf32>
    %4 = arith.truncf %1 : vector<8x64xf32> to vector<8x64xbf16>
    %cst_4 = arith.constant dense<0.000000e+00> : vector<8x256xf32>
    %5 = tpu.matmul %4, %0, %cst_4 {dimension_numbers = #tpu.dot_dimension_numbers<[1], [0], [0], [1], [0, 0, 1, 1], [], []>} : vector<8x64xbf16>, vector<64x256xbf16>, vector<8x256xf32> -> vector<8x256xf32>
    %6 = arith.addf %3, %5 : vector<8x256xf32>
    %7 = arith.negf %6 : vector<8x256xf32>
    %8 = math.exp %7 : vector<8x256xf32>
    %cst_5 = arith.constant 1.000000e+00 : f32
    %9 = vector.broadcast %cst_5 : f32 to vector<8x256xf32>
    %10 = arith.addf %9, %8 : vector<8x256xf32>
    %11 = arith.divf %9, %10 : vector<8x256xf32>
    %12 = math.tanh %6 : vector<8x256xf32>
    %13 = vector.extract_strided_slice %11 {offsets = [0, 0], sizes = [8, 64], strides = [1, 1]} : vector<8x256xf32> to vector<8x64xf32>
    %14 = vector.extract_strided_slice %11 {offsets = [0, 64], sizes = [8, 64], strides = [1, 1]} : vector<8x256xf32> to vector<8x64xf32>
    %15 = vector.extract_strided_slice %12 {offsets = [0, 128], sizes = [8, 64], strides = [1, 1]} : vector<8x256xf32> to vector<8x64xf32>
    %16 = vector.extract_strided_slice %11 {offsets = [0, 192], sizes = [8, 64], strides = [1, 1]} : vector<8x256xf32> to vector<8x64xf32>
    %17 = arith.mulf %14, %2 : vector<8x64xf32>
    %18 = arith.mulf %13, %15 : vector<8x64xf32>
    %19 = arith.addf %17, %18 : vector<8x64xf32>
    %20 = math.tanh %19 : vector<8x64xf32>
    %21 = arith.mulf %16, %20 : vector<8x64xf32>
    %22 = vector.extract_strided_slice %21 {offsets = [0, 0], sizes = [8, 32], strides = [1, 1]} : vector<8x64xf32> to vector<8x32xf32>
    %c0_6 = arith.constant 0 : index
    %c0_7 = arith.constant 0 : index
    %23 = vector.load %arg6[%c0_6, %c0_7] : memref<64x64xf32, #tpu.memory_space<vmem>>, vector<8x32xf32>
    tpu.vector_store %arg6[%c0_6, %c0_7], %22 {strides = array<i32>} : memref<64x64xf32, #tpu.memory_space<vmem>>, vector<8x32xf32>,
    %24 = vector.extract_strided_slice %21 {offsets = [0, 32], sizes = [8, 32], strides = [1, 1]} : vector<8x64xf32> to vector<8x32xf32>
    %c56 = arith.constant 56 : index
    %c32 = arith.constant 32 : index
    %25 = vector.load %arg6[%c56, %c32] : memref<64x64xf32, #tpu.memory_space<vmem>>, vector<8x32xf32>
    tpu.vector_store %arg6[%c56, %c32], %24 {strides = array<i32>} : memref<64x64xf32, #tpu.memory_space<vmem>>, vector<8x32xf32>,
    %c8 = arith.constant 8 : index
    %c0_8 = arith.constant 0 : index
    %26 = vector.load %arg0[%c8, %c0_8] : memref<64x256xf32, #tpu.memory_space<vmem>>, vector<8x256xf32>
    %27 = arith.truncf %21 : vector<8x64xf32> to vector<8x64xbf16>
    %cst_9 = arith.constant dense<0.000000e+00> : vector<8x256xf32>
    %28 = tpu.matmul %27, %0, %cst_9 {dimension_numbers = #tpu.dot_dimension_numbers<[1], [0], [0], [1], [0, 0, 1, 1], [], []>} : vector<8x64xbf16>, vector<64x256xbf16>, vector<8x256xf32> -> vector<8x256xf32>
    %29 = arith.addf %26, %28 : vector<8x256xf32>
    %30 = arith.negf %29 : vector<8x256xf32>
    %31 = math.exp %30 : vector<8x256xf32>
    %cst_10 = arith.constant 1.000000e+00 : f32
    %32 = vector.broadcast %cst_10 : f32 to vector<8x256xf32>
    %33 = arith.addf %32, %31 : vector<8x256xf32>
    %34 = arith.divf %32, %33 : vector<8x256xf32>
    %35 = math.tanh %29 : vector<8x256xf32>
    %36 = vector.extract_strided_slice %34 {offsets = [0, 0], sizes = [8, 64], strides = [1, 1]} : vector<8x256xf32> to vector<8x64xf32>
    %37 = vector.extract_strided_slice %34 {offsets = [0, 64], sizes = [8, 64], strides = [1, 1]} : vector<8x256xf32> to vector<8x64xf32>
    %38 = vector.extract_strided_slice %35 {offsets = [0, 128], sizes = [8, 64], strides = [1, 1]} : vector<8x256xf32> to vector<8x64xf32>
    %39 = vector.extract_strided_slice %34 {offsets = [0, 192], sizes = [8, 64], strides = [1, 1]} : vector<8x256xf32> to vector<8x64xf32>
    %40 = arith.mulf %37, %19 : vector<8x64xf32>
    %41 = arith.mulf %36, %38 : vector<8x64xf32>
    %42 = arith.addf %40, %41 : vector<8x64xf32>
    %43 = math.tanh %42 : vector<8x64xf32>
    %44 = arith.mulf %39, %43 : vector<8x64xf32>
    %45 = vector.extract_strided_slice %44 {offsets = [0, 0], sizes = [8, 32], strides = [1, 1]} : vector<8x64xf32> to vector<8x32xf32>
    %c8_11 = arith.constant 8 : index
    %c0_12 = arith.constant 0 : index
    %46 = vector.load %arg6[%c8_11, %c0_12] : memref<64x64xf32, #tpu.memory_space<vmem>>, vector<8x32xf32>
    tpu.vector_store %arg6[%c8_11, %c0_12], %45 {strides = array<i32>} : memref<64x64xf32, #tpu.memory_space<vmem>>, vector<8x32xf32>,
    %47 = vector.extract_strided_slice %44 {offsets = [0, 32], sizes = [8, 32], strides = [1, 1]} : vector<8x64xf32> to vector<8x32xf32>
    %c48 = arith.constant 48 : index
    %c32_13 = arith.constant 32 : index
    %48 = vector.load %arg6[%c48, %c32_13] : memref<64x64xf32, #tpu.memory_space<vmem>>, vector<8x32xf32>
    tpu.vector_store %arg6[%c48, %c32_13], %47 {strides = array<i32>} : memref<64x64xf32, #tpu.memory_space<vmem>>, vector<8x32xf32>,
    %c16 = arith.constant 16 : index
    %c0_14 = arith.constant 0 : index
    %49 = vector.load %arg0[%c16, %c0_14] : memref<64x256xf32, #tpu.memory_space<vmem>>, vector<8x256xf32>
    %50 = arith.truncf %44 : vector<8x64xf32> to vector<8x64xbf16>
    %cst_15 = arith.constant dense<0.000000e+00> : vector<8x256xf32>
    %51 = tpu.matmul %50, %0, %cst_15 {dimension_numbers = #tpu.dot_dimension_numbers<[1], [0], [0], [1], [0, 0, 1, 1], [], []>} : vector<8x64xbf16>, vector<64x256xbf16>, vector<8x256xf32> -> vector<8x256xf32>
    %52 = arith.addf %49, %51 : vector<8x256xf32>
    %53 = arith.negf %52 : vector<8x256xf32>
    %54 = math.exp %53 : vector<8x256xf32>
    %cst_16 = arith.constant 1.000000e+00 : f32
    %55 = vector.broadcast %cst_16 : f32 to vector<8x256xf32>
    %56 = arith.addf %55, %54 : vector<8x256xf32>
    %57 = arith.divf %55, %56 : vector<8x256xf32>
    %58 = math.tanh %52 : vector<8x256xf32>
    %59 = vector.extract_strided_slice %57 {offsets = [0, 0], sizes = [8, 64], strides = [1, 1]} : vector<8x256xf32> to vector<8x64xf32>
    %60 = vector.extract_strided_slice %57 {offsets = [0, 64], sizes = [8, 64], strides = [1, 1]} : vector<8x256xf32> to vector<8x64xf32>
    %61 = vector.extract_strided_slice %58 {offsets = [0, 128], sizes = [8, 64], strides = [1, 1]} : vector<8x256xf32> to vector<8x64xf32>
    %62 = vector.extract_strided_slice %57 {offsets = [0, 192], sizes = [8, 64], strides = [1, 1]} : vector<8x256xf32> to vector<8x64xf32>
    %63 = arith.mulf %60, %42 : vector<8x64xf32>
    %64 = arith.mulf %59, %61 : vector<8x64xf32>
    %65 = arith.addf %63, %64 : vector<8x64xf32>
    %66 = math.tanh %65 : vector<8x64xf32>
    %67 = arith.mulf %62, %66 : vector<8x64xf32>
    %68 = vector.extract_strided_slice %67 {offsets = [0, 0], sizes = [8, 32], strides = [1, 1]} : vector<8x64xf32> to vector<8x32xf32>
    %c16_17 = arith.constant 16 : index
    %c0_18 = arith.constant 0 : index
    %69 = vector.load %arg6[%c16_17, %c0_18] : memref<64x64xf32, #tpu.memory_space<vmem>>, vector<8x32xf32>
    tpu.vector_store %arg6[%c16_17, %c0_18], %68 {strides = array<i32>} : memref<64x64xf32, #tpu.memory_space<vmem>>, vector<8x32xf32>,
    %70 = vector.extract_strided_slice %67 {offsets = [0, 32], sizes = [8, 32], strides = [1, 1]} : vector<8x64xf32> to vector<8x32xf32>
    %c40 = arith.constant 40 : index
    %c32_19 = arith.constant 32 : index
    %71 = vector.load %arg6[%c40, %c32_19] : memref<64x64xf32, #tpu.memory_space<vmem>>, vector<8x32xf32>
    tpu.vector_store %arg6[%c40, %c32_19], %70 {strides = array<i32>} : memref<64x64xf32, #tpu.memory_space<vmem>>, vector<8x32xf32>,
    %c24 = arith.constant 24 : index
    %c0_20 = arith.constant 0 : index
    %72 = vector.load %arg0[%c24, %c0_20] : memref<64x256xf32, #tpu.memory_space<vmem>>, vector<8x256xf32>
    %73 = arith.truncf %67 : vector<8x64xf32> to vector<8x64xbf16>
    %cst_21 = arith.constant dense<0.000000e+00> : vector<8x256xf32>
    %74 = tpu.matmul %73, %0, %cst_21 {dimension_numbers = #tpu.dot_dimension_numbers<[1], [0], [0], [1], [0, 0, 1, 1], [], []>} : vector<8x64xbf16>, vector<64x256xbf16>, vector<8x256xf32> -> vector<8x256xf32>
    %75 = arith.addf %72, %74 : vector<8x256xf32>
    %76 = arith.negf %75 : vector<8x256xf32>
    %77 = math.exp %76 : vector<8x256xf32>
    %cst_22 = arith.constant 1.000000e+00 : f32
    %78 = vector.broadcast %cst_22 : f32 to vector<8x256xf32>
    %79 = arith.addf %78, %77 : vector<8x256xf32>
    %80 = arith.divf %78, %79 : vector<8x256xf32>
    %81 = math.tanh %75 : vector<8x256xf32>
    %82 = vector.extract_strided_slice %80 {offsets = [0, 0], sizes = [8, 64], strides = [1, 1]} : vector<8x256xf32> to vector<8x64xf32>
    %83 = vector.extract_strided_slice %80 {offsets = [0, 64], sizes = [8, 64], strides = [1, 1]} : vector<8x256xf32> to vector<8x64xf32>
    %84 = vector.extract_strided_slice %81 {offsets = [0, 128], sizes = [8, 64], strides = [1, 1]} : vector<8x256xf32> to vector<8x64xf32>
    %85 = vector.extract_strided_slice %80 {offsets = [0, 192], sizes = [8, 64], strides = [1, 1]} : vector<8x256xf32> to vector<8x64xf32>
    %86 = arith.mulf %83, %65 : vector<8x64xf32>
    %87 = arith.mulf %82, %84 : vector<8x64xf32>
    %88 = arith.addf %86, %87 : vector<8x64xf32>
    %89 = math.tanh %88 : vector<8x64xf32>
    %90 = arith.mulf %85, %89 : vector<8x64xf32>
    %91 = vector.extract_strided_slice %90 {offsets = [0, 0], sizes = [8, 32], strides = [1, 1]} : vector<8x64xf32> to vector<8x32xf32>
    %c24_23 = arith.constant 24 : index
    %c0_24 = arith.constant 0 : index
    %92 = vector.load %arg6[%c24_23, %c0_24] : memref<64x64xf32, #tpu.memory_space<vmem>>, vector<8x32xf32>
    tpu.vector_store %arg6[%c24_23, %c0_24], %91 {strides = array<i32>} : memref<64x64xf32, #tpu.memory_space<vmem>>, vector<8x32xf32>,
    %93 = vector.extract_strided_slice %90 {offsets = [0, 32], sizes = [8, 32], strides = [1, 1]} : vector<8x64xf32> to vector<8x32xf32>
    %c32_25 = arith.constant 32 : index
    %c32_26 = arith.constant 32 : index
    %94 = vector.load %arg6[%c32_25, %c32_26] : memref<64x64xf32, #tpu.memory_space<vmem>>, vector<8x32xf32>
    tpu.vector_store %arg6[%c32_25, %c32_26], %93 {strides = array<i32>} : memref<64x64xf32, #tpu.memory_space<vmem>>, vector<8x32xf32>,
    %c32_27 = arith.constant 32 : index
    %c0_28 = arith.constant 0 : index
    %95 = vector.load %arg0[%c32_27, %c0_28] : memref<64x256xf32, #tpu.memory_space<vmem>>, vector<8x256xf32>
    %96 = arith.truncf %90 : vector<8x64xf32> to vector<8x64xbf16>
    %cst_29 = arith.constant dense<0.000000e+00> : vector<8x256xf32>
    %97 = tpu.matmul %96, %0, %cst_29 {dimension_numbers = #tpu.dot_dimension_numbers<[1], [0], [0], [1], [0, 0, 1, 1], [], []>} : vector<8x64xbf16>, vector<64x256xbf16>, vector<8x256xf32> -> vector<8x256xf32>
    %98 = arith.addf %95, %97 : vector<8x256xf32>
    %99 = arith.negf %98 : vector<8x256xf32>
    %100 = math.exp %99 : vector<8x256xf32>
    %cst_30 = arith.constant 1.000000e+00 : f32
    %101 = vector.broadcast %cst_30 : f32 to vector<8x256xf32>
    %102 = arith.addf %101, %100 : vector<8x256xf32>
    %103 = arith.divf %101, %102 : vector<8x256xf32>
    %104 = math.tanh %98 : vector<8x256xf32>
    %105 = vector.extract_strided_slice %103 {offsets = [0, 0], sizes = [8, 64], strides = [1, 1]} : vector<8x256xf32> to vector<8x64xf32>
    %106 = vector.extract_strided_slice %103 {offsets = [0, 64], sizes = [8, 64], strides = [1, 1]} : vector<8x256xf32> to vector<8x64xf32>
    %107 = vector.extract_strided_slice %104 {offsets = [0, 128], sizes = [8, 64], strides = [1, 1]} : vector<8x256xf32> to vector<8x64xf32>
    %108 = vector.extract_strided_slice %103 {offsets = [0, 192], sizes = [8, 64], strides = [1, 1]} : vector<8x256xf32> to vector<8x64xf32>
    %109 = arith.mulf %106, %88 : vector<8x64xf32>
    %110 = arith.mulf %105, %107 : vector<8x64xf32>
    %111 = arith.addf %109, %110 : vector<8x64xf32>
    %112 = math.tanh %111 : vector<8x64xf32>
    %113 = arith.mulf %108, %112 : vector<8x64xf32>
    %114 = vector.extract_strided_slice %113 {offsets = [0, 0], sizes = [8, 32], strides = [1, 1]} : vector<8x64xf32> to vector<8x32xf32>
    %c32_31 = arith.constant 32 : index
    %c0_32 = arith.constant 0 : index
    %115 = vector.load %arg6[%c32_31, %c0_32] : memref<64x64xf32, #tpu.memory_space<vmem>>, vector<8x32xf32>
    tpu.vector_store %arg6[%c32_31, %c0_32], %114 {strides = array<i32>} : memref<64x64xf32, #tpu.memory_space<vmem>>, vector<8x32xf32>,
    %116 = vector.extract_strided_slice %113 {offsets = [0, 32], sizes = [8, 32], strides = [1, 1]} : vector<8x64xf32> to vector<8x32xf32>
    %c24_33 = arith.constant 24 : index
    %c32_34 = arith.constant 32 : index
    %117 = vector.load %arg6[%c24_33, %c32_34] : memref<64x64xf32, #tpu.memory_space<vmem>>, vector<8x32xf32>
    tpu.vector_store %arg6[%c24_33, %c32_34], %116 {strides = array<i32>} : memref<64x64xf32, #tpu.memory_space<vmem>>, vector<8x32xf32>,
    %c40_35 = arith.constant 40 : index
    %c0_36 = arith.constant 0 : index
    %118 = vector.load %arg0[%c40_35, %c0_36] : memref<64x256xf32, #tpu.memory_space<vmem>>, vector<8x256xf32>
    %119 = arith.truncf %113 : vector<8x64xf32> to vector<8x64xbf16>
    %cst_37 = arith.constant dense<0.000000e+00> : vector<8x256xf32>
    %120 = tpu.matmul %119, %0, %cst_37 {dimension_numbers = #tpu.dot_dimension_numbers<[1], [0], [0], [1], [0, 0, 1, 1], [], []>} : vector<8x64xbf16>, vector<64x256xbf16>, vector<8x256xf32> -> vector<8x256xf32>
    %121 = arith.addf %118, %120 : vector<8x256xf32>
    %122 = arith.negf %121 : vector<8x256xf32>
    %123 = math.exp %122 : vector<8x256xf32>
    %cst_38 = arith.constant 1.000000e+00 : f32
    %124 = vector.broadcast %cst_38 : f32 to vector<8x256xf32>
    %125 = arith.addf %124, %123 : vector<8x256xf32>
    %126 = arith.divf %124, %125 : vector<8x256xf32>
    %127 = math.tanh %121 : vector<8x256xf32>
    %128 = vector.extract_strided_slice %126 {offsets = [0, 0], sizes = [8, 64], strides = [1, 1]} : vector<8x256xf32> to vector<8x64xf32>
    %129 = vector.extract_strided_slice %126 {offsets = [0, 64], sizes = [8, 64], strides = [1, 1]} : vector<8x256xf32> to vector<8x64xf32>
    %130 = vector.extract_strided_slice %127 {offsets = [0, 128], sizes = [8, 64], strides = [1, 1]} : vector<8x256xf32> to vector<8x64xf32>
    %131 = vector.extract_strided_slice %126 {offsets = [0, 192], sizes = [8, 64], strides = [1, 1]} : vector<8x256xf32> to vector<8x64xf32>
    %132 = arith.mulf %129, %111 : vector<8x64xf32>
    %133 = arith.mulf %128, %130 : vector<8x64xf32>
    %134 = arith.addf %132, %133 : vector<8x64xf32>
    %135 = math.tanh %134 : vector<8x64xf32>
    %136 = arith.mulf %131, %135 : vector<8x64xf32>
    %137 = vector.extract_strided_slice %136 {offsets = [0, 0], sizes = [8, 32], strides = [1, 1]} : vector<8x64xf32> to vector<8x32xf32>
    %c40_39 = arith.constant 40 : index
    %c0_40 = arith.constant 0 : index
    %138 = vector.load %arg6[%c40_39, %c0_40] : memref<64x64xf32, #tpu.memory_space<vmem>>, vector<8x32xf32>
    tpu.vector_store %arg6[%c40_39, %c0_40], %137 {strides = array<i32>} : memref<64x64xf32, #tpu.memory_space<vmem>>, vector<8x32xf32>,
    %139 = vector.extract_strided_slice %136 {offsets = [0, 32], sizes = [8, 32], strides = [1, 1]} : vector<8x64xf32> to vector<8x32xf32>
    %c16_41 = arith.constant 16 : index
    %c32_42 = arith.constant 32 : index
    %140 = vector.load %arg6[%c16_41, %c32_42] : memref<64x64xf32, #tpu.memory_space<vmem>>, vector<8x32xf32>
    tpu.vector_store %arg6[%c16_41, %c32_42], %139 {strides = array<i32>} : memref<64x64xf32, #tpu.memory_space<vmem>>, vector<8x32xf32>,
    %c48_43 = arith.constant 48 : index
    %c0_44 = arith.constant 0 : index
    %141 = vector.load %arg0[%c48_43, %c0_44] : memref<64x256xf32, #tpu.memory_space<vmem>>, vector<8x256xf32>
    %142 = arith.truncf %136 : vector<8x64xf32> to vector<8x64xbf16>
    %cst_45 = arith.constant dense<0.000000e+00> : vector<8x256xf32>
    %143 = tpu.matmul %142, %0, %cst_45 {dimension_numbers = #tpu.dot_dimension_numbers<[1], [0], [0], [1], [0, 0, 1, 1], [], []>} : vector<8x64xbf16>, vector<64x256xbf16>, vector<8x256xf32> -> vector<8x256xf32>
    %144 = arith.addf %141, %143 : vector<8x256xf32>
    %145 = arith.negf %144 : vector<8x256xf32>
    %146 = math.exp %145 : vector<8x256xf32>
    %cst_46 = arith.constant 1.000000e+00 : f32
    %147 = vector.broadcast %cst_46 : f32 to vector<8x256xf32>
    %148 = arith.addf %147, %146 : vector<8x256xf32>
    %149 = arith.divf %147, %148 : vector<8x256xf32>
    %150 = math.tanh %144 : vector<8x256xf32>
    %151 = vector.extract_strided_slice %149 {offsets = [0, 0], sizes = [8, 64], strides = [1, 1]} : vector<8x256xf32> to vector<8x64xf32>
    %152 = vector.extract_strided_slice %149 {offsets = [0, 64], sizes = [8, 64], strides = [1, 1]} : vector<8x256xf32> to vector<8x64xf32>
    %153 = vector.extract_strided_slice %150 {offsets = [0, 128], sizes = [8, 64], strides = [1, 1]} : vector<8x256xf32> to vector<8x64xf32>
    %154 = vector.extract_strided_slice %149 {offsets = [0, 192], sizes = [8, 64], strides = [1, 1]} : vector<8x256xf32> to vector<8x64xf32>
    %155 = arith.mulf %152, %134 : vector<8x64xf32>
    %156 = arith.mulf %151, %153 : vector<8x64xf32>
    %157 = arith.addf %155, %156 : vector<8x64xf32>
    %158 = math.tanh %157 : vector<8x64xf32>
    %159 = arith.mulf %154, %158 : vector<8x64xf32>
    %160 = vector.extract_strided_slice %159 {offsets = [0, 0], sizes = [8, 32], strides = [1, 1]} : vector<8x64xf32> to vector<8x32xf32>
    %c48_47 = arith.constant 48 : index
    %c0_48 = arith.constant 0 : index
    %161 = vector.load %arg6[%c48_47, %c0_48] : memref<64x64xf32, #tpu.memory_space<vmem>>, vector<8x32xf32>
    tpu.vector_store %arg6[%c48_47, %c0_48], %160 {strides = array<i32>} : memref<64x64xf32, #tpu.memory_space<vmem>>, vector<8x32xf32>,
    %162 = vector.extract_strided_slice %159 {offsets = [0, 32], sizes = [8, 32], strides = [1, 1]} : vector<8x64xf32> to vector<8x32xf32>
    %c8_49 = arith.constant 8 : index
    %c32_50 = arith.constant 32 : index
    %163 = vector.load %arg6[%c8_49, %c32_50] : memref<64x64xf32, #tpu.memory_space<vmem>>, vector<8x32xf32>
    tpu.vector_store %arg6[%c8_49, %c32_50], %162 {strides = array<i32>} : memref<64x64xf32, #tpu.memory_space<vmem>>, vector<8x32xf32>,
    %c56_51 = arith.constant 56 : index
    %c0_52 = arith.constant 0 : index
    %164 = vector.load %arg0[%c56_51, %c0_52] : memref<64x256xf32, #tpu.memory_space<vmem>>, vector<8x256xf32>
    %165 = arith.truncf %159 : vector<8x64xf32> to vector<8x64xbf16>
    %cst_53 = arith.constant dense<0.000000e+00> : vector<8x256xf32>
    %166 = tpu.matmul %165, %0, %cst_53 {dimension_numbers = #tpu.dot_dimension_numbers<[1], [0], [0], [1], [0, 0, 1, 1], [], []>} : vector<8x64xbf16>, vector<64x256xbf16>, vector<8x256xf32> -> vector<8x256xf32>
    %167 = arith.addf %164, %166 : vector<8x256xf32>
    %168 = arith.negf %167 : vector<8x256xf32>
    %169 = math.exp %168 : vector<8x256xf32>
    %cst_54 = arith.constant 1.000000e+00 : f32
    %170 = vector.broadcast %cst_54 : f32 to vector<8x256xf32>
    %171 = arith.addf %170, %169 : vector<8x256xf32>
    %172 = arith.divf %170, %171 : vector<8x256xf32>
    %173 = math.tanh %167 : vector<8x256xf32>
    %174 = vector.extract_strided_slice %172 {offsets = [0, 0], sizes = [8, 64], strides = [1, 1]} : vector<8x256xf32> to vector<8x64xf32>
    %175 = vector.extract_strided_slice %172 {offsets = [0, 64], sizes = [8, 64], strides = [1, 1]} : vector<8x256xf32> to vector<8x64xf32>
    %176 = vector.extract_strided_slice %173 {offsets = [0, 128], sizes = [8, 64], strides = [1, 1]} : vector<8x256xf32> to vector<8x64xf32>
    %177 = vector.extract_strided_slice %172 {offsets = [0, 192], sizes = [8, 64], strides = [1, 1]} : vector<8x256xf32> to vector<8x64xf32>
    %178 = arith.mulf %175, %157 : vector<8x64xf32>
    %179 = arith.mulf %174, %176 : vector<8x64xf32>
    %180 = arith.addf %178, %179 : vector<8x64xf32>
    %181 = math.tanh %180 : vector<8x64xf32>
    %182 = arith.mulf %177, %181 : vector<8x64xf32>
    %183 = vector.extract_strided_slice %182 {offsets = [0, 0], sizes = [8, 32], strides = [1, 1]} : vector<8x64xf32> to vector<8x32xf32>
    %c56_55 = arith.constant 56 : index
    %c0_56 = arith.constant 0 : index
    %184 = vector.load %arg6[%c56_55, %c0_56] : memref<64x64xf32, #tpu.memory_space<vmem>>, vector<8x32xf32>
    tpu.vector_store %arg6[%c56_55, %c0_56], %183 {strides = array<i32>} : memref<64x64xf32, #tpu.memory_space<vmem>>, vector<8x32xf32>,
    %185 = vector.extract_strided_slice %182 {offsets = [0, 32], sizes = [8, 32], strides = [1, 1]} : vector<8x64xf32> to vector<8x32xf32>
    %c0_57 = arith.constant 0 : index
    %c32_58 = arith.constant 32 : index
    %186 = vector.load %arg6[%c0_57, %c32_58] : memref<64x64xf32, #tpu.memory_space<vmem>>, vector<8x32xf32>
    tpu.vector_store %arg6[%c0_57, %c32_58], %185 {strides = array<i32>} : memref<64x64xf32, #tpu.memory_space<vmem>>, vector<8x32xf32>,
    %c0_59 = arith.constant 0 : index
    %c0_60 = arith.constant 0 : index
    %187 = vector.load %arg6[%c0_59, %c0_60] : memref<64x64xf32, #tpu.memory_space<vmem>>, vector<64x64xf32>
    %188 = arith.truncf %187 : vector<64x64xf32> to vector<64x64xbf16>
    %c0_61 = arith.constant 0 : index
    %c0_62 = arith.constant 0 : index
    %189 = vector.load %arg2[%c0_61, %c0_62] : memref<64x64xbf16, #tpu.memory_space<vmem>>, vector<64x64xbf16>
    %cst_63 = arith.constant dense<0.000000e+00> : vector<64x64xf32>
    %190 = tpu.matmul %188, %189, %cst_63 {dimension_numbers = #tpu.dot_dimension_numbers<[1], [0], [0], [1], [0, 0, 1, 1], [], []>} : vector<64x64xbf16>, vector<64x64xbf16>, vector<64x64xf32> -> vector<64x64xf32>
    %c0_64 = arith.constant 0 : index
    %c0_65 = arith.constant 0 : index
    %191 = vector.load %arg4[%c0_64, %c0_65] : memref<1x80xf32, #tpu.memory_space<vmem>>, vector<1x64xf32>
    %192 = vector.broadcast %191 : vector<1x64xf32> to vector<64x64xf32>
    %193 = arith.addf %190, %192 : vector<64x64xf32>
    %194 = math.tanh %193 : vector<64x64xf32>
    %195 = vector.extract_strided_slice %194 {offsets = [0, 0], sizes = [8, 64], strides = [1, 1]} : vector<64x64xf32> to vector<8x64xf32>
    %196 = vector.extract_strided_slice %194 {offsets = [8, 0], sizes = [8, 64], strides = [1, 1]} : vector<64x64xf32> to vector<8x64xf32>
    %197 = arith.addf %195, %196 : vector<8x64xf32>
    %198 = vector.extract_strided_slice %194 {offsets = [16, 0], sizes = [8, 64], strides = [1, 1]} : vector<64x64xf32> to vector<8x64xf32>
    %199 = arith.addf %197, %198 : vector<8x64xf32>
    %200 = vector.extract_strided_slice %194 {offsets = [24, 0], sizes = [8, 64], strides = [1, 1]} : vector<64x64xf32> to vector<8x64xf32>
    %201 = arith.addf %199, %200 : vector<8x64xf32>
    %202 = vector.extract_strided_slice %194 {offsets = [32, 0], sizes = [8, 64], strides = [1, 1]} : vector<64x64xf32> to vector<8x64xf32>
    %203 = arith.addf %201, %202 : vector<8x64xf32>
    %204 = vector.extract_strided_slice %194 {offsets = [40, 0], sizes = [8, 64], strides = [1, 1]} : vector<64x64xf32> to vector<8x64xf32>
    %205 = arith.addf %203, %204 : vector<8x64xf32>
    %206 = vector.extract_strided_slice %194 {offsets = [48, 0], sizes = [8, 64], strides = [1, 1]} : vector<64x64xf32> to vector<8x64xf32>
    %207 = arith.addf %205, %206 : vector<8x64xf32>
    %208 = vector.extract_strided_slice %194 {offsets = [56, 0], sizes = [8, 64], strides = [1, 1]} : vector<64x64xf32> to vector<8x64xf32>
    %209 = arith.addf %207, %208 : vector<8x64xf32>
    %cst_66 = arith.constant 1.250000e-01 : f32
    %210 = vector.broadcast %cst_66 : f32 to vector<8x64xf32>
    %211 = arith.mulf %209, %210 : vector<8x64xf32>
    %212 = arith.truncf %211 : vector<8x64xf32> to vector<8x64xbf16>
    %c0_67 = arith.constant 0 : index
    %c0_68 = arith.constant 0 : index
    %213 = vector.load %arg3[%c0_67, %c0_68] : memref<64x16xbf16, #tpu.memory_space<vmem>>, vector<64x16xbf16>
    %cst_69 = arith.constant dense<0.000000e+00> : vector<8x16xf32>
    %214 = tpu.matmul %212, %213, %cst_69 {dimension_numbers = #tpu.dot_dimension_numbers<[1], [0], [0], [1], [0, 0, 1, 1], [], []>} : vector<8x64xbf16>, vector<64x16xbf16>, vector<8x16xf32> -> vector<8x16xf32>
    %c0_70 = arith.constant 0 : index
    %c64 = arith.constant 64 : index
    %215 = vector.load %arg4[%c0_70, %c64] : memref<1x80xf32, #tpu.memory_space<vmem>>, vector<1x16xf32>
    %216 = vector.broadcast %215 : vector<1x16xf32> to vector<8x16xf32>
    %217 = arith.addf %214, %216 : vector<8x16xf32>
    %218 = arith.mulf %217, %217 : vector<8x16xf32>
    %cst_71 = arith.constant dense<0.000000e+00> : vector<8xf32>
    %219 = vector.multi_reduction <add>, %218, %cst_71 [1] : vector<8x16xf32> to vector<8xf32>
    %220 = vector.shape_cast %219 : vector<8xf32> to vector<8x1xf32>
    %cst_72 = arith.constant 1.000000e-24 : f32
    %221 = vector.broadcast %cst_72 : f32 to vector<8x1xf32>
    %222 = arith.maximumf %220, %221 : vector<8x1xf32>
    %223 = math.rsqrt %222 : vector<8x1xf32>
    %224 = vector.broadcast %223 : vector<8x1xf32> to vector<8x16xf32>
    %225 = arith.mulf %217, %224 : vector<8x16xf32>
    %c0_73 = arith.constant 0 : index
    %c0_74 = arith.constant 0 : index
    %226 = vector.load %arg5[%c0_73, %c0_74] : memref<8x16xf32, #tpu.memory_space<vmem>>, vector<8x16xf32>
    tpu.vector_store %arg5[%c0_73, %c0_74], %225 {strides = array<i32>} : memref<8x16xf32, #tpu.memory_space<vmem>>, vector<8x16xf32>,
    return
  }
}

</mosaic_0001>

<bundles_post_ra>
// kernel: tpu_custom_call.1
= control target key start
LH: loop header
LB: loop body
LE: loop exit
PB: predicated region body
PF: predicated region fallthrough
CT: control target
= control target key end

     0   :  { %10 = vsyncpa [#allocation4], 0  ;;  %s1563_s0 = inlined_call_operand.hbm [shape: f32[64,256], index: 0, kind: input, shape index: {}]   ;;  %s1564_s1 = inlined_call_operand.hbm [shape: bf16[64,256], index: 1, kind: input, shape index: {}]   ;;  %s1565_s2 = inlined_call_operand.vmem [shape: bf16[64,64], index: 2, kind: input, shape index: {}]   ;;  %s1566_s3 = inlined_call_operand.vmem [shape: bf16[64,16], index: 3, kind: input, shape index: {}]   ;;  %s1567_s4 = inlined_call_operand.vmem [shape: f32[1,80], index: 4, kind: input, shape index: {}]   ;;  %s1568_s5 = inlined_call_operand.hbm [shape: f32[8,16], index: 5, kind: output, shape index: {}]  }
   0x1   :  { %11 = vsyncpa [#allocation7], 0 }
   0x2   :  { %12 = vsyncpa [#allocation5], 0  ;;  %s1288_s18 = smov [#allocation3]   ;;  %s1216_s22 = scalar_lea.hbm %s1563_s0, 2048 }
   0x3   :  { %s18_s19 = sshll.u32 %s1288_s18, 4  ;;  %p1217_p0 = scmp.ne.s32.totalorder %s1563_s0, %s1216_s22  ;;  %s19_s19 = int_to_ptr.vmem [resolvable:$true] %s18_s19 }
   0x4   :  { %p1220_p1 = scmp.lt.u32.totalorder %s1216_s22, %s1563_s0 }
   0x6   :  { %p1222_p2 = pnand %p1220_p1, %p1217_p0 }
   0x8   :  { %1225 = shalt.err (!%p1222_p2)
}
   0x9   :  { %s1226_s27 = scalar_lea.vmem %s19_s19, 2048  ;;  %p1231_p4 = scmp.lt.s32.totalorder %s19_s19, %s19_s19 }
   0xa   :  { %p1227_p3 = scmp.ne.s32.totalorder %s19_s19, %s1226_s27  ;;  %p1232_p5 = scmp.lt.s32.totalorder %s1226_s27, %s1226_s27 }
   0xc   :  { %p1233_p6 = por %p1232_p5, %p1231_p4 }
   0xe   :  { %p1234_p7 = pnand %p1233_p6, %p1227_p3 }
  0x10   :  { %1237 = shalt.err (!%p1234_p7)
}
  0x11   :  { %s1289_s28 = smov 256   ;;  %s1290_s29 = smov 16  }
  0x12   :  { %24 = dma.hbm_to_vmem [thread:$0]  %s1563_s0, 2048, %s19_s19, [#allocation4], %s1289_s28, %s1289_s28, %s1290_s29  }
  0x13   :  { %s1291_s7 = smov [#allocation6]   ;;  %s1238_s11 = scalar_lea.hbm %s1564_s1, 1024 }
  0x14   :  { %s30_s8 = sshll.u32 %s1291_s7, 4  ;;  %p1239_p8 = scmp.ne.s32.totalorder %s1564_s1, %s1238_s11  ;;  %s31_s8 = int_to_ptr.vmem [resolvable:$true] %s30_s8 }
  0x15   :  { %p1242_p9 = scmp.lt.u32.totalorder %s1238_s11, %s1564_s1 }
  0x17   :  { %p1244_p10 = pnand %p1242_p9, %p1239_p8 }
  0x19   :  { %1247 = shalt.err (!%p1244_p10)
}
  0x1a   :  { %s1248_s16 = scalar_lea.vmem %s31_s8, 1024  ;;  %p1253_p12 = scmp.lt.s32.totalorder %s31_s8, %s31_s8 }
  0x1b   :  { %p1249_p11 = scmp.ne.s32.totalorder %s31_s8, %s1248_s16  ;;  %p1254_p13 = scmp.lt.s32.totalorder %s1248_s16, %s1248_s16 }
  0x1d   :  { %p1255_p0 = por %p1254_p13, %p1253_p12 }
  0x1f   :  { %p1256_p1 = pnand %p1255_p0, %p1249_p11 }
  0x21   :  { %1259 = shalt.err (!%p1256_p1)
}
  0x22   :  { %s1292_s0 = smov 128   ;;  %s1293_s17 = smov 8  }
  0x23   :  { %36 = dma.hbm_to_vmem [thread:$0]  %s1564_s1, 1024, %s31_s8, [#allocation7], %s1292_s0, %s1292_s0, %s1293_s17  }
  0x24   :  { %1282 = dma.done.wait [#allocation4], 2048  }
  0x25   :  { %1283 = vsyncadd [#allocation4], 4294965248 }
  0x26   :  { %1284 = dma.done.wait [#allocation7], 1024  }
  0x27   :  { %1285 = vsyncadd [#allocation7], 4294966272  ;;  %v1294_v0 = vmov 0   ;;  %v1355_v1 = vld [vmem:[#allocation6 + $0x4] ss:$8 sps:$4 sm:$0xff]   ;;  %s1295_s1 = smov 64  }
  0x28   :  { %136 = vmatprep.mubr.bf16.mxu0 %v1294_v0  ;;  %218 = vmatprep.mubr.bf16.mxu1 %v1294_v0  ;;  %v1357_v2 = vld [vmem:[#allocation6] ss:$8 sps:$4 sm:$0xff]   ;;  %v1360_v3 = vld [vmem:[#allocation6 + $0x14] ss:$8 sps:$4 sm:$0xff]   ;;  %v1364_v4 = vld [vmem:[#allocation6 + $0x10] ss:$8 sps:$4 sm:$0xff]  }
  0x29   :  { %104 = vmatprep.subr.bf16.mxu0 %v1355_v1  ;;  %186 = vmatprep.subr.bf16.mxu1 %v1355_v1  ;;  %v1368_v5 = vld [vmem:[#allocation6 + $0x24] ss:$8 sps:$4 sm:$0xff]   ;;  %v1371_v6 = vld [vmem:[#allocation6 + $0x20] ss:$8 sps:$4 sm:$0xff]   ;;  %v1373_v7 = vld [vmem:[#allocation6 + $0x34] ss:$8 sps:$4 sm:$0xff]  }
  0x2a   :  { %105 = vmatpush1.bf16.msra.mxu0 %v1357_v2  ;;  %187 = vmatpush1.bf16.msra.mxu1 %v1357_v2  ;;  %v1380_v8 = vld [vmem:[#allocation6 + $0x30] ss:$8 sps:$4 sm:$0xff]   ;;  %v58_v9 = vld [vmem:[#allocation3] sm:$0xff]  ;;  %v59_v16 = vld [vmem:[#allocation3 + $0x8] sm:$0xff]  ;;  %vm100_vm0 = vcmask 523264   ;;  %vm173_vm1 = vcmask 261120  }
  0x2b   :  { %106 = vmatprep.subr.bf16.mxu0 %v1360_v3  ;;  %188 = vmatprep.subr.bf16.mxu1 %v1360_v3  ;;  %v177_v34 = vld [vmem:[#allocation3 + $0x10] sm:$0xff]  ;;  %v178_v41 = vld [vmem:[#allocation3 + $0x18] sm:$0xff]  ;;  %v257_v59 = vld [vmem:[#allocation3 + $0x20] sm:$0xff]  ;;  %vm175_vm2 = vcmask 523520   ;;  %vm1297_vm3 = vmmov 0   ;;  %vm961_vm4 = vcmask 130048  }
  0x2e   :  { %107 = vmatpush1.bf16.msra.mxu0 %v1364_v4  ;;  %189 = vmatpush1.bf16.msra.mxu1 %v1364_v4 }
  0x2f   :  { %108 = vmatprep.subr.bf16.mxu0 %v1368_v5  ;;  %190 = vmatprep.subr.bf16.mxu1 %v1368_v5 }
  0x32   :  { %109 = vmatpush1.bf16.msra.mxu0 %v1371_v6  ;;  %191 = vmatpush1.bf16.msra.mxu1 %v1371_v6 }
  0x33   :  { %110 = vmatprep.subr.bf16.mxu0 %v1373_v7  ;;  %192 = vmatprep.subr.bf16.mxu1 %v1373_v7 }
  0x36   :  { %111 = vmatpush1.bf16.msra.mxu0 %v1380_v8  ;;  %193 = vmatpush1.bf16.msra.mxu1 %v1380_v8 }
  0x37   :  { %266 = vmatprep.subr.bf16.mxu0 %v1355_v1  ;;  %346 = vmatprep.subr.bf16.mxu1 %v1355_v1 }
  0x39   :  { %137 = vmatmul.mubr.bf16.vlgmr.msra.gmra.mrb[0].mxu0 %v1294_v0 }
  0x3a   :  { %267 = vmatpush1.bf16.msra.mxu0 %v1357_v2  ;;  %298 = vmatprep.mubr.bf16.mxu0 %v1294_v0 }
  0x3b   :  { %268 = vmatprep.subr.bf16.mxu0 %v1360_v3 }
  0x3e   :  { %269 = vmatpush1.bf16.msra.mxu0 %v1364_v4 }
  0x3f   :  { %270 = vmatprep.subr.bf16.mxu0 %v1368_v5 }
  0x42   :  { %271 = vmatpush1.bf16.msra.mxu0 %v1371_v6 }
  0x43   :  { %272 = vmatprep.subr.bf16.mxu0 %v1373_v7 }
  0x46   :  { %273 = vmatpush1.bf16.msra.mxu0 %v1380_v8 }
  0x47   :  { %426 = vmatprep.subr.bf16.mxu0 %v1355_v1 }
 0x10c   :  { %v138_v10 = vpop.f32.mrb[0].mxu0 }
 0x10d   :  { %v145_v11 = vadd.f32 %v138_v10, %v58_v9  ;;  %v140_v12 = vpop.f32.mrb[1].mxu0 }
 0x10e   :  { %v142_v13 = vpop.f32.mrb[2].mxu0  ;;  %v146_v17 = vadd.f32 %v140_v12, %v59_v16 }
 0x10f   :  { %v993_v14 = vmul.f32 -1.442695, %v145_v11  ;;  %v143_v15 = vpop.f32.mrb[3].mxu0  ;;  %v258_v11 = vld [vmem:[#allocation3 + $0x28] sm:$0xff] }
 0x110   :  { %v994_v23 = vmul.f32 -1.442695, %v146_v17 }
 0x111   :  { %1102 = vpow2.f32 %v993_v14 }
 0x112   :  { %1104 = vtanh.f32 %v146_v17 }
 0x11b   :  { %v1103_v18 = vpop.eup %1102 }
 0x11c   :  { %v153_v19 = vadd.f32 1.0, %v1103_v18  ;;  %v1105_v20 = vpop.eup %1104 }
 0x11e   :  { %1106 = vrcp.f32 %v153_v19 }
 0x11f   :  { %1108 = vpow2.f32 %v994_v23 }
 0x128   :  { %v1107_v21 = vpop.eup %1106 }
 0x129   :  { %v161_v22 = vmul.f32 %v1107_v21, %v1105_v20  ;;  %v1109_v24 = vpop.eup %1108  ;;  %v160_v26 = vmul.f32 0.0, %v1107_v21 }
 0x12a   :  { %v154_v25 = vadd.f32 1.0, %v1109_v24 }
 0x12b   :  { %163 = vrot.lane.b32.xlu0 %v161_v22, %s1295_s1 }
 0x12c   :  { %1110 = vrcp.f32 %v154_v25 }
 0x136   :  { %v1111_v29 = vpop.eup %1110 }
 0x19d   :  { %v164_v27 = vpop.permute.xlu0 %163 }
 0x19e   :  { %v166_v28 = vadd.f32 %v164_v27, %v160_v26 }
 0x1a0   :  { %1112 = vtanh.f32 %v166_v28 }
 0x1aa   :  { %v1113_v30 = vpop.eup %1112 }
 0x1ab   :  { %v1400_v31 = vmul.f32 %v1113_v30, %v1111_v29  ;;  %v337_v29 = vld [vmem:[#allocation3 + $0x30] sm:$0xff] }
 0x1ad   :  { %v179_v32 = vpack.c.bf16 %v1400_v31, %v1400_v31 }
 0x1af   :  { %181 = vrot.lane.b32.xlu0 %v179_v32, %s1295_s1 }
 0x221   :  { %v182_v33 = vpop.permute.xlu0 %181 }
 0x222   :  { %995 = vmatmul.mubr.msk.bf16.vlgmr.msra.gmra.mrb[0].mxu1 %vm100_vm0, %v182_v33 }
 0x223   :  { %347 = vmatpush1.bf16.msra.mxu1 %v1357_v2  ;;  %378 = vmatprep.mubr.bf16.mxu1 %v1294_v0 }
 0x224   :  { %348 = vmatprep.subr.bf16.mxu1 %v1360_v3 }
 0x227   :  { %349 = vmatpush1.bf16.msra.mxu1 %v1364_v4 }
 0x228   :  { %350 = vmatprep.subr.bf16.mxu1 %v1368_v5 }
 0x22b   :  { %351 = vmatpush1.bf16.msra.mxu1 %v1371_v6 }
 0x22c   :  { %352 = vmatprep.subr.bf16.mxu1 %v1373_v7 }
 0x22f   :  { %353 = vmatpush1.bf16.msra.mxu1 %v1380_v8 }
 0x230   :  { %506 = vmatprep.subr.bf16.mxu1 %v1355_v1 }
 0x2f5   :  { %v220_v35 = vpop.f32.mrb[0].mxu1 }
 0x2f6   :  { %v227_v36 = vadd.f32 %v220_v35, %v177_v34  ;;  %v222_v37 = vpop.f32.mrb[1].mxu1 }
 0x2f7   :  { %v224_v38 = vpop.f32.mrb[2].mxu1  ;;  %v228_v42 = vadd.f32 %v222_v37, %v178_v41  ;;  %v338_v37 = vld [vmem:[#allocation3 + $0x38] sm:$0xff] }
 0x2f8   :  { %v996_v39 = vmul.f32 -1.442695, %v227_v36  ;;  %v225_v40 = vpop.f32.mrb[3].mxu1 }
 0x2f9   :  { %v997_v48 = vmul.f32 -1.442695, %v228_v42 }
 0x2fa   :  { %1114 = vpow2.f32 %v996_v39 }
 0x2fb   :  { %1116 = vtanh.f32 %v228_v42 }
 0x304   :  { %v1115_v43 = vpop.eup %1114 }
 0x305   :  { %v235_v44 = vadd.f32 1.0, %v1115_v43  ;;  %v1117_v45 = vpop.eup %1116 }
 0x307   :  { %1118 = vrcp.f32 %v235_v44 }
 0x308   :  { %1120 = vpow2.f32 %v997_v48 }
 0x311   :  { %v1119_v46 = vpop.eup %1118 }
 0x312   :  { %v243_v47 = vmul.f32 %v1119_v46, %v1117_v45  ;;  %v1121_v49 = vpop.eup %1120  ;;  %v242_v51 = vmul.f32 %v1119_v46, %v166_v28 }
 0x313   :  { %v236_v50 = vadd.f32 1.0, %v1121_v49 }
 0x314   :  { %245 = vrot.lane.b32.xlu1 %v243_v47, %s1295_s1 }
 0x315   :  { %1122 = vrcp.f32 %v236_v50 }
 0x31f   :  { %v1123_v54 = vpop.eup %1122 }
 0x386   :  { %v246_v52 = vpop.permute.xlu1 %245 }
 0x387   :  { %v248_v53 = vadd.f32 %v246_v52, %v242_v51 }
 0x389   :  { %1124 = vtanh.f32 %v248_v53 }
 0x393   :  { %v1125_v55 = vpop.eup %1124 }
 0x394   :  { %v1416_v56 = vmul.f32 %v1125_v55, %v1123_v54  ;;  %v417_v54 = vld [vmem:[#allocation3 + $0x40] sm:$0xff] }
 0x396   :  { %v259_v57 = vpack.c.bf16 %v1416_v56, %v1416_v56 }
 0x398   :  { %261 = vrot.lane.b32.xlu1 %v259_v57, %s1295_s1 }
 0x40a   :  { %v262_v58 = vpop.permute.xlu1 %261 }
 0x40b   :  { %998 = vmatmul.mubr.msk.bf16.vlgmr.msra.gmra.mrb[4].mxu0 %vm100_vm0, %v262_v58 }
 0x40c   :  { %427 = vmatpush1.bf16.msra.mxu0 %v1357_v2  ;;  %458 = vmatprep.mubr.bf16.mxu0 %v1294_v0 }
 0x40d   :  { %428 = vmatprep.subr.bf16.mxu0 %v1360_v3 }
 0x410   :  { %429 = vmatpush1.bf16.msra.mxu0 %v1364_v4 }
 0x411   :  { %430 = vmatprep.subr.bf16.mxu0 %v1368_v5 }
 0x414   :  { %431 = vmatpush1.bf16.msra.mxu0 %v1371_v6 }
 0x415   :  { %432 = vmatprep.subr.bf16.mxu0 %v1373_v7 }
 0x418   :  { %433 = vmatpush1.bf16.msra.mxu0 %v1380_v8 }
 0x419   :  { %586 = vmatprep.subr.bf16.mxu0 %v1355_v1 }
 0x4de   :  { %v300_v60 = vpop.f32.mrb[4].mxu0 }
 0x4df   :  { %v307_v61 = vadd.f32 %v300_v60, %v257_v59  ;;  %v302_v62 = vpop.f32.mrb[5].mxu0 }
 0x4e0   :  { %v304_v63 = vpop.f32.mrb[6].mxu0  ;;  %v308_v12 = vadd.f32 %v302_v62, %v258_v11  ;;  %v418_v62 = vld [vmem:[#allocation3 + $0x48] sm:$0xff] }
 0x4e1   :  { %v999_v9 = vmul.f32 -1.442695, %v307_v61  ;;  %v305_v10 = vpop.f32.mrb[7].mxu0 }
 0x4e2   :  { %v1000_v18 = vmul.f32 -1.442695, %v308_v12 }
 0x4e3   :  { %1126 = vpow2.f32 %v999_v9 }
 0x4e4   :  { %1128 = vtanh.f32 %v308_v12 }
 0x4ed   :  { %v1127_v13 = vpop.eup %1126 }
 0x4ee   :  { %v315_v14 = vadd.f32 1.0, %v1127_v13  ;;  %v1129_v15 = vpop.eup %1128 }
 0x4f0   :  { %1130 = vrcp.f32 %v315_v14 }
 0x4f1   :  { %1132 = vpow2.f32 %v1000_v18 }
 0x4fa   :  { %v1131_v16 = vpop.eup %1130 }
 0x4fb   :  { %v323_v17 = vmul.f32 %v1131_v16, %v1129_v15  ;;  %v1133_v19 = vpop.eup %1132  ;;  %v322_v21 = vmul.f32 %v1131_v16, %v248_v53 }
 0x4fc   :  { %v316_v20 = vadd.f32 1.0, %v1133_v19 }
 0x4fd   :  { %325 = vrot.lane.b32.xlu0 %v323_v17, %s1295_s1 }
 0x4fe   :  { %1134 = vrcp.f32 %v316_v20 }
 0x508   :  { %v1135_v24 = vpop.eup %1134 }
 0x56f   :  { %v326_v22 = vpop.permute.xlu0 %325 }
 0x570   :  { %v328_v23 = vadd.f32 %v326_v22, %v322_v21 }
 0x572   :  { %1136 = vtanh.f32 %v328_v23 }
 0x57c   :  { %v1137_v25 = vpop.eup %1136 }
 0x57d   :  { %v1432_v26 = vmul.f32 %v1137_v25, %v1135_v24  ;;  %v497_v25 = vld [vmem:[#allocation3 + $0x50] sm:$0xff] }
 0x57f   :  { %v339_v27 = vpack.c.bf16 %v1432_v26, %v1432_v26 }
 0x581   :  { %341 = vrot.lane.b32.xlu1 %v339_v27, %s1295_s1 }
 0x5f3   :  { %v342_v28 = vpop.permute.xlu1 %341 }
 0x5f4   :  { %1001 = vmatmul.mubr.msk.bf16.vlgmr.msra.gmra.mrb[4].mxu1 %vm100_vm0, %v342_v28 }
 0x5f5   :  { %507 = vmatpush1.bf16.msra.mxu1 %v1357_v2  ;;  %538 = vmatprep.mubr.bf16.mxu1 %v1294_v0 }
 0x5f6   :  { %508 = vmatprep.subr.bf16.mxu1 %v1360_v3 }
 0x5f9   :  { %509 = vmatpush1.bf16.msra.mxu1 %v1364_v4 }
 0x5fa   :  { %510 = vmatprep.subr.bf16.mxu1 %v1368_v5 }
 0x5fd   :  { %511 = vmatpush1.bf16.msra.mxu1 %v1371_v6 }
 0x5fe   :  { %512 = vmatprep.subr.bf16.mxu1 %v1373_v7 }
 0x601   :  { %513 = vmatpush1.bf16.msra.mxu1 %v1380_v8 }
 0x602   :  { %666 = vmatprep.subr.bf16.mxu1 %v1355_v1 }
 0x6c7   :  { %v380_v30 = vpop.f32.mrb[4].mxu1 }
 0x6c8   :  { %v387_v32 = vadd.f32 %v380_v30, %v337_v29  ;;  %v382_v33 = vpop.f32.mrb[5].mxu1 }
 0x6c9   :  { %v384_v34 = vpop.f32.mrb[6].mxu1  ;;  %v388_v38 = vadd.f32 %v382_v33, %v338_v37 }
 0x6ca   :  { %v1002_v35 = vmul.f32 -1.442695, %v387_v32  ;;  %v385_v36 = vpop.f32.mrb[7].mxu1 }
 0x6cb   :  { %v1003_v1 = vmul.f32 -1.442695, %v388_v38 }
 0x6cc   :  { %1138 = vpow2.f32 %v1002_v35 }
 0x6cd   :  { %1140 = vtanh.f32 %v388_v38 }
 0x6d6   :  { %v1139_v39 = vpop.eup %1138 }
 0x6d7   :  { %v395_v40 = vadd.f32 1.0, %v1139_v39  ;;  %v1141_v41 = vpop.eup %1140 }
 0x6d9   :  { %1142 = vrcp.f32 %v395_v40 }
 0x6da   :  { %1144 = vpow2.f32 %v1003_v1  ;;  %v577_v1 = vld [vmem:[#allocation3 + $0x60] sm:$0xff] }
 0x6e3   :  { %v1143_v42 = vpop.eup %1142 }
 0x6e4   :  { %v403_v43 = vmul.f32 %v1143_v42, %v1141_v41  ;;  %v1145_v44 = vpop.eup %1144  ;;  %v402_v46 = vmul.f32 %v1143_v42, %v328_v23 }
 0x6e5   :  { %v396_v45 = vadd.f32 1.0, %v1145_v44 }
 0x6e6   :  { %405 = vrot.lane.b32.xlu0 %v403_v43, %s1295_s1 }
 0x6e7   :  { %1146 = vrcp.f32 %v396_v45 }
 0x6f1   :  { %v1147_v49 = vpop.eup %1146 }
 0x758   :  { %v406_v47 = vpop.permute.xlu0 %405 }
 0x759   :  { %v408_v48 = vadd.f32 %v406_v47, %v402_v46 }
 0x75b   :  { %1148 = vtanh.f32 %v408_v48 }
 0x765   :  { %v1149_v50 = vpop.eup %1148 }
 0x766   :  { %v1448_v51 = vmul.f32 %v1149_v50, %v1147_v49  ;;  %v578_v50 = vld [vmem:[#allocation3 + $0x68] sm:$0xff] }
 0x768   :  { %v419_v52 = vpack.c.bf16 %v1448_v51, %v1448_v51 }
 0x76a   :  { %421 = vrot.lane.b32.xlu1 %v419_v52, %s1295_s1 }
 0x7dc   :  { %v422_v53 = vpop.permute.xlu1 %421 }
 0x7dd   :  { %1004 = vmatmul.mubr.msk.bf16.vlgmr.msra.gmra.mrb[8].mxu0 %vm100_vm0, %v422_v53 }
 0x7de   :  { %587 = vmatpush1.bf16.msra.mxu0 %v1357_v2  ;;  %618 = vmatprep.mubr.bf16.mxu0 %v1294_v0 }
 0x7df   :  { %588 = vmatprep.subr.bf16.mxu0 %v1360_v3 }
 0x7e2   :  { %589 = vmatpush1.bf16.msra.mxu0 %v1364_v4 }
 0x7e3   :  { %590 = vmatprep.subr.bf16.mxu0 %v1368_v5 }
 0x7e6   :  { %591 = vmatpush1.bf16.msra.mxu0 %v1371_v6 }
 0x7e7   :  { %592 = vmatprep.subr.bf16.mxu0 %v1373_v7 }
 0x7ea   :  { %593 = vmatpush1.bf16.msra.mxu0 %v1380_v8 }
 0x8b0   :  { %v460_v55 = vpop.f32.mrb[8].mxu0 }
 0x8b1   :  { %v467_v57 = vadd.f32 %v460_v55, %v417_v54  ;;  %v462_v58 = vpop.f32.mrb[9].mxu0 }
 0x8b2   :  { %v464_v59 = vpop.f32.mrb[10].mxu0  ;;  %v468_v63 = vadd.f32 %v462_v58, %v418_v62 }
 0x8b3   :  { %v1005_v60 = vmul.f32 -1.442695, %v467_v57  ;;  %v465_v61 = vpop.f32.mrb[11].mxu0 }
 0x8b4   :  { %v1006_v14 = vmul.f32 -1.442695, %v468_v63 }
 0x8b5   :  { %1150 = vpow2.f32 %v1005_v60 }
 0x8b6   :  { %1152 = vtanh.f32 %v468_v63 }
 0x8bf   :  { %v1151_v9 = vpop.eup %1150 }
 0x8c0   :  { %v475_v10 = vadd.f32 1.0, %v1151_v9  ;;  %v1153_v11 = vpop.eup %1152 }
 0x8c2   :  { %1154 = vrcp.f32 %v475_v10 }
 0x8c3   :  { %1156 = vpow2.f32 %v1006_v14 }
 0x8cc   :  { %v1155_v12 = vpop.eup %1154 }
 0x8cd   :  { %v483_v13 = vmul.f32 %v1155_v12, %v1153_v11  ;;  %v1157_v15 = vpop.eup %1156  ;;  %v482_v17 = vmul.f32 %v1155_v12, %v408_v48 }
 0x8ce   :  { %v476_v16 = vadd.f32 1.0, %v1157_v15 }
 0x8cf   :  { %485 = vrot.lane.b32.xlu0 %v483_v13, %s1295_s1 }
 0x8d0   :  { %1158 = vrcp.f32 %v476_v16 }
 0x8da   :  { %v1159_v20 = vpop.eup %1158 }
 0x941   :  { %v486_v18 = vpop.permute.xlu0 %485 }
 0x942   :  { %v488_v19 = vadd.f32 %v486_v18, %v482_v17 }
 0x944   :  { %1160 = vtanh.f32 %v488_v19 }
 0x94e   :  { %v1161_v21 = vpop.eup %1160 }
 0x94f   :  { %v1463_v22 = vmul.f32 %v1161_v21, %v1159_v20 }
 0x951   :  { %v499_v23 = vpack.c.bf16 %v1463_v22, %v1463_v22 }
 0x953   :  { %501 = vrot.lane.b32.xlu1 %v499_v23, %s1295_s1 }
 0x9c5   :  { %v502_v24 = vpop.permute.xlu1 %501 }
 0x9c6   :  { %1007 = vmatmul.mubr.msk.bf16.vlgmr.msra.gmra.mrb[8].mxu1 %vm100_vm0, %v502_v24 }
 0x9c7   :  { %667 = vmatpush1.bf16.msra.mxu1 %v1357_v2  ;;  %698 = vmatprep.mubr.bf16.mxu1 %v1294_v0  ;;  %v498_v0 = vld [vmem:[#allocation3 + $0x58] sm:$0xff] }
 0x9c8   :  { %668 = vmatprep.subr.bf16.mxu1 %v1360_v3 }
 0x9cb   :  { %669 = vmatpush1.bf16.msra.mxu1 %v1364_v4 }
 0x9cc   :  { %670 = vmatprep.subr.bf16.mxu1 %v1368_v5 }
 0x9cf   :  { %671 = vmatpush1.bf16.msra.mxu1 %v1371_v6 }
 0x9d0   :  { %672 = vmatprep.subr.bf16.mxu1 %v1373_v7 }
 0x9d3   :  { %673 = vmatpush1.bf16.msra.mxu1 %v1380_v8 }
 0xa99   :  { %v540_v27 = vpop.f32.mrb[8].mxu1 }
 0xa9a   :  { %v547_v28 = vadd.f32 %v540_v27, %v497_v25  ;;  %v542_v29 = vpop.f32.mrb[9].mxu1 }
 0xa9b   :  { %v544_v30 = vpop.f32.mrb[10].mxu1  ;;  %v548_v3 = vadd.f32 %v542_v29, %v498_v0 }
 0xa9c   :  { %v1008_v2 = vmul.f32 -1.442695, %v547_v28  ;;  %v545_v32 = vpop.f32.mrb[11].mxu1  ;;  %v1094_v30 = vld [vmem:[%s1565_s2] sm:$0xff]  }
 0xa9d   :  { %v1009_v7 = vmul.f32 -1.442695, %v548_v3  ;;  %1043 = vmatprep.subr.bf16.mxu0 %v1094_v30 }
 0xa9e   :  { %1162 = vpow2.f32 %v1008_v2 }
 0xa9f   :  { %1164 = vtanh.f32 %v548_v3 }
 0xaa8   :  { %v1163_v33 = vpop.eup %1162 }
 0xaa9   :  { %v555_v4 = vadd.f32 1.0, %v1163_v33  ;;  %v1165_v5 = vpop.eup %1164 }
 0xaab   :  { %1166 = vrcp.f32 %v555_v4 }
 0xaac   :  { %1168 = vpow2.f32 %v1009_v7 }
 0xab5   :  { %v1167_v6 = vpop.eup %1166 }
 0xab6   :  { %v563_v34 = vmul.f32 %v1167_v6, %v1165_v5  ;;  %v1169_v8 = vpop.eup %1168  ;;  %v562_v36 = vmul.f32 %v1167_v6, %v488_v19 }
 0xab7   :  { %v556_v35 = vadd.f32 1.0, %v1169_v8 }
 0xab8   :  { %565 = vrot.lane.b32.xlu0 %v563_v34, %s1295_s1  ;;  %v1097_v34 = vld [vmem:[%s1565_s2 + $0x18] sm:$0xff]  }
 0xab9   :  { %1170 = vrcp.f32 %v556_v35 }
 0xac3   :  { %v1171_v39 = vpop.eup %1170 }
 0xb2a   :  { %v566_v37 = vpop.permute.xlu0 %565 }
 0xb2b   :  { %v568_v38 = vadd.f32 %v566_v37, %v562_v36 }
 0xb2d   :  { %1172 = vtanh.f32 %v568_v38 }
 0xb37   :  { %v1173_v40 = vpop.eup %1172 }
 0xb38   :  { %v1478_v41 = vmul.f32 %v1173_v40, %v1171_v39 }
 0xb3a   :  { %v579_v42 = vpack.c.bf16 %v1478_v41, %v1478_v41 }
 0xb3c   :  { %581 = vrot.lane.b32.xlu1 %v579_v42, %s1295_s1 }
 0xbae   :  { %v582_v43 = vpop.permute.xlu1 %581 }
 0xbaf   :  { %1010 = vmatmul.mubr.msk.bf16.vlgmr.msra.gmra.mrb[12].mxu0 %vm100_vm0, %v582_v43 }
 0xbb0   :  { %1044 = vmatpush3.bf16.msra.mxu0 %v1094_v30 }
 0xc82   :  { %v620_v44 = vpop.f32.mrb[12].mxu0 }
 0xc83   :  { %v627_v45 = vadd.f32 %v620_v44, %v577_v1  ;;  %v622_v46 = vpop.f32.mrb[13].mxu0 }
 0xc84   :  { %v624_v47 = vpop.f32.mrb[14].mxu0  ;;  %v628_v52 = vadd.f32 %v622_v46, %v578_v50 }
 0xc85   :  { %v1011_v48 = vmul.f32 -1.442695, %v627_v45  ;;  %v625_v49 = vpop.f32.mrb[15].mxu0 }
 0xc86   :  { %v1012_v59 = vmul.f32 -1.442695, %v628_v52 }
 0xc87   :  { %1174 = vpow2.f32 %v1011_v48 }
 0xc88   :  { %1176 = vtanh.f32 %v628_v52  ;;  %v1016_v52 = vld [vmem:[%s1567_s4] ss:$0 sm:$0xff] }
 0xc91   :  { %v1175_v53 = vpop.eup %1174 }
 0xc92   :  { %v635_v54 = vadd.f32 1.0, %v1175_v53  ;;  %v1177_v55 = vpop.eup %1176  ;;  %v1098_v53 = vld [vmem:[%s1566_s3] sm:$0xff]  }
 0xc94   :  { %1178 = vrcp.f32 %v635_v54  ;;  %v1296_v54 = vmov 0.0  }
 0xc95   :  { %1180 = vpow2.f32 %v1012_v59  ;;  %1059 = vmatprep.subr.bf16.mxu1 %v1296_v54 }
 0xc9e   :  { %v1179_v57 = vpop.eup %1178 }
 0xc9f   :  { %v643_v58 = vmul.f32 %v1179_v57, %v1177_v55  ;;  %v1181_v60 = vpop.eup %1180  ;;  %v642_v62 = vmul.f32 %v1179_v57, %v568_v38  ;;  %v1099_v55 = vld [vmem:[%s1566_s3 + $0x8] sm:$0xff]   ;;  %v1100_v57 = vld [vmem:[%s1566_s3 + $0x10] sm:$0xff]  }
 0xca0   :  { %v636_v61 = vadd.f32 1.0, %v1181_v60 }
 0xca1   :  { %645 = vrot.lane.b32.xlu0 %v643_v58, %s1295_s1  ;;  %v1101_v58 = vld [vmem:[%s1566_s3 + $0x18] sm:$0xff]   ;;  %s1298_s3 = smov [#allocation8]  }
 0xca2   :  { %1182 = vrcp.f32 %v636_v61  ;;  %s975_s11 = sshll.u32 %s1298_s3, 4  ;;  %s976_s11 = int_to_ptr.vmem [resolvable:$true] %s975_s11 }
 0xca3   :  { %s1260_s12 = scalar_lea.vmem %s976_s11, 128  ;;  %p1265_p3 = scmp.lt.s32.totalorder %s976_s11, %s976_s11 }
 0xca4   :  { %p1261_p2 = scmp.ne.s32.totalorder %s976_s11, %s1260_s12  ;;  %p1266_p4 = scmp.lt.s32.totalorder %s1260_s12, %s1260_s12 }
 0xca6   :  { %p1267_p5 = por %p1266_p4, %p1265_p3 }
 0xca8   :  { %p1268_p6 = pnand %p1267_p5, %p1261_p2 }
 0xcac   :  { %v1183_v10 = vpop.eup %1182 }
 0xd13   :  { %v646_v63 = vpop.permute.xlu0 %645 }
 0xd14   :  { %v648_v9 = vadd.f32 %v646_v63, %v642_v62 }
 0xd16   :  { %1184 = vtanh.f32 %v648_v9 }
 0xd20   :  { %v1185_v11 = vpop.eup %1184 }
 0xd21   :  { %v650_v12 = vmul.f32 %v1185_v11, %v1183_v10 }
 0xd23   :  { %v659_v13 = vpack.c.bf16 %v650_v12, %v650_v12 }
 0xd25   :  { %661 = vrot.lane.b32.xlu1 %v659_v13, %s1295_s1 }
 0xd29   :  { %170 = vrot.lane.b32.xlu1 %v1400_v31, %s1295_s1  ;;  %v657_v31 = vld [vmem:[#allocation3 + $0x70] sm:$0xff] }
 0xd2d   :  { %332 = vrot.lane.b32.xlu1 %v1432_v26, %s1295_s1 }
 0xd31   :  { %652 = vrot.lane.b32.xlu1 %v650_v12, %s1295_s1 }
 0xd35   :  { %492 = vrot.lane.b32.xlu1 %v1463_v22, %s1295_s1  ;;  %v658_v22 = vld [vmem:[#allocation3 + $0x78] sm:$0xff] }
 0xd39   :  { %914 = vrot.lane.b32.xlu1 %v1016_v52, %s1295_s1 }
 0xd97   :  { %v662_v14 = vpop.permute.xlu1 %661 }
 0xd98   :  { %1013 = vmatmul.mubr.msk.bf16.vlgmr.msra.gmra.mrb[12].mxu1 %vm100_vm0, %v662_v14 }
 0xd99   :  { %1060 = vmatpush3.bf16.msra.mxu1 %v1098_v53  ;;  %1067 = vmatprep.mubr.msk.bf16.mxu1 %vm1297_vm3, %v1296_v54 }
 0xd9a   :  { %1061 = vmatprep.subr.bf16.mxu1 %v1296_v54 }
 0xd9b   :  { %v171_v15 = vpop.permute.xlu1 %170 }
 0xd9c   :  { %174 = vst.msk [vmem:[#allocation2] sm:$0xff] %vm173_vm1, %v171_v15 }
 0xd9d   :  { %176 = vst.msk [vmem:[#allocation2 + $0x38] sm:$0xff] %vm175_vm2, %v171_v15  ;;  %1062 = vmatpush3.bf16.msra.mxu1 %v1099_v55 }
 0xd9e   :  { %1063 = vmatprep.subr.bf16.mxu1 %v1296_v54 }
 0xd9f   :  { %v333_v16 = vpop.permute.xlu1 %332 }
 0xda0   :  { %335 = vst.msk [vmem:[#allocation2 + $0x10] sm:$0xff] %vm173_vm1, %v333_v16 }
 0xda1   :  { %336 = vst.msk [vmem:[#allocation2 + $0x28] sm:$0xff] %vm175_vm2, %v333_v16  ;;  %1064 = vmatpush3.bf16.msra.mxu1 %v1100_v57 }
 0xda2   :  { %1065 = vmatprep.subr.bf16.mxu1 %v1296_v54 }
 0xda3   :  { %v653_v5 = vpop.permute.xlu1 %652 }
 0xda5   :  { %1066 = vmatpush3.bf16.msra.mxu1 %v1101_v58 }
 0xda7   :  { %v493_v8 = vpop.permute.xlu1 %492 }
 0xe6b   :  { %v700_v26 = vpop.f32.mrb[12].mxu1 }
 0xe6c   :  { %v707_v17 = vadd.f32 %v700_v26, %v657_v31  ;;  %v702_v18 = vpop.f32.mrb[13].mxu1 }
 0xe6d   :  { %v704_v19 = vpop.f32.mrb[14].mxu1  ;;  %v708_v23 = vadd.f32 %v702_v18, %v658_v22 }
 0xe6e   :  { %v1014_v20 = vmul.f32 -1.442695, %v707_v17  ;;  %v705_v21 = vpop.f32.mrb[15].mxu1 }
 0xe6f   :  { %v1015_v2 = vmul.f32 -1.442695, %v708_v23 }
 0xe70   :  { %1186 = vpow2.f32 %v1014_v20 }
 0xe71   :  { %1188 = vtanh.f32 %v708_v23 }
 0xe7a   :  { %v1187_v24 = vpop.eup %1186 }
 0xe7b   :  { %v715_v25 = vadd.f32 1.0, %v1187_v24  ;;  %v1189_v27 = vpop.eup %1188 }
 0xe7d   :  { %1190 = vrcp.f32 %v715_v25 }
 0xe7e   :  { %1192 = vpow2.f32 %v1015_v2 }
 0xe87   :  { %v1191_v28 = vpop.eup %1190 }
 0xe88   :  { %v723_v29 = vmul.f32 %v1191_v28, %v1189_v27  ;;  %v1193_v32 = vpop.eup %1192  ;;  %v722_v3 = vmul.f32 %v1191_v28, %v648_v9 }
 0xe89   :  { %v716_v0 = vadd.f32 1.0, %v1193_v32 }
 0xe8a   :  { %725 = vrot.lane.b32.xlu0 %v723_v29, %s1295_s1 }
 0xe8b   :  { %1194 = vrcp.f32 %v716_v0 }
 0xe8e   :  { %252 = vrot.lane.b32.xlu0 %v1416_v56, %s1295_s1  ;;  %v1095_v56 = vld [vmem:[%s1565_s2 + $0x8] sm:$0xff]  }
 0xe8f   :  { %1045 = vmatprep.subr.bf16.mxu0 %v1095_v56 }
 0xe90   :  { %1046 = vmatpush3.bf16.msra.mxu0 %v1095_v56 }
 0xe92   :  { %412 = vrot.lane.b32.xlu0 %v1448_v51, %s1295_s1  ;;  %v1096_v51 = vld [vmem:[%s1565_s2 + $0x10] sm:$0xff]  }
 0xe93   :  { %1047 = vmatprep.subr.bf16.mxu0 %v1096_v51 }
 0xe94   :  { %1048 = vmatpush3.bf16.msra.mxu0 %v1096_v51 }
 0xe95   :  { %1049 = vmatprep.subr.bf16.mxu0 %v1097_v34  ;;  %v1195_v35 = vpop.eup %1194 }
 0xe98   :  { %1050 = vmatpush3.bf16.msra.mxu0 %v1097_v34 }
 0xefc   :  { %v726_v33 = vpop.permute.xlu0 %725 }
 0xefd   :  { %v728_v4 = vadd.f32 %v726_v33, %v722_v3 }
 0xeff   :  { %1196 = vtanh.f32 %v728_v4  ;;  %v915_v4 = vpop.permute.xlu1 %914 }
 0xf00   :  { %v253_v6 = vpop.permute.xlu0 %252 }
 0xf01   :  { %255 = vst.msk [vmem:[#allocation2 + $0x8] sm:$0xff] %vm173_vm1, %v253_v6 }
 0xf02   :  { %256 = vst.msk [vmem:[#allocation2 + $0x30] sm:$0xff] %vm175_vm2, %v253_v6  ;;  %656 = vst.msk [vmem:[#allocation2 + $0x8] sm:$0xff] %vm175_vm2, %v653_v5 }
 0xf03   :  { %655 = vst.msk [vmem:[#allocation2 + $0x30] sm:$0xff] %vm173_vm1, %v653_v5 }
 0xf04   :  { %v413_v7 = vpop.permute.xlu0 %412 }
 0xf05   :  { %415 = vst.msk [vmem:[#allocation2 + $0x18] sm:$0xff] %vm173_vm1, %v413_v7 }
 0xf06   :  { %416 = vst.msk [vmem:[#allocation2 + $0x20] sm:$0xff] %vm175_vm2, %v413_v7  ;;  %496 = vst.msk [vmem:[#allocation2 + $0x18] sm:$0xff] %vm175_vm2, %v493_v8 }
 0xf07   :  { %495 = vst.msk [vmem:[#allocation2 + $0x20] sm:$0xff] %vm173_vm1, %v493_v8 }
 0xf09   :  { %v1197_v36 = vpop.eup %1196  ;;  %v738_v42 = vld [vmem:[#allocation2 + $0x8] sm:$0xff] }
 0xf0a   :  { %v730_v37 = vmul.f32 %v1197_v36, %v1195_v35  ;;  %v743_v49 = vld [vmem:[#allocation2 + $0x30] sm:$0xff] }
 0xf0c   :  { %732 = vrot.lane.b32.xlu0 %v730_v37, %s1295_s1 }
 0xf0d   :  { %v740_v1 = vld [vmem:[#allocation2 + $0x18] sm:$0xff] }
 0xf0e   :  { %v741_v45 = vld [vmem:[#allocation2 + $0x20] sm:$0xff] }
 0xf10   :  { %572 = vrot.lane.b32.xlu0 %v1478_v41, %s1295_s1 }
 0xf7e   :  { %v733_v38 = vpop.permute.xlu0 %732 }
 0xf7f   :  { %735 = vst.msk [vmem:[#allocation2 + $0x38] sm:$0xff] %vm173_vm1, %v733_v38 }
 0xf80   :  { %736 = vst.msk [vmem:[#allocation2] sm:$0xff] %vm175_vm2, %v733_v38 }
 0xf82   :  { %v573_v39 = vpop.permute.xlu0 %572 }
 0xf83   :  { %575 = vst.msk [vmem:[#allocation2 + $0x28] sm:$0xff] %vm173_vm1, %v573_v39 }
 0xf84   :  { %576 = vst.msk [vmem:[#allocation2 + $0x10] sm:$0xff] %vm175_vm2, %v573_v39 }
 0xf86   :  { %v744_v48 = vld [vmem:[#allocation2 + $0x38] sm:$0xff] }
 0xf87   :  { %v737_v40 = vld [vmem:[#allocation2] sm:$0xff]  ;;  %v748_v50 = vpack.c.bf16 %v744_v48, %v743_v49 }
 0xf88   :  { %v745_v43 = vpack.c.bf16 %v738_v42, %v737_v40 }
 0xf8a   :  { %1051 = vmatprep.mubr.msk.bf16.mxu0 %vm100_vm0, %v745_v43  ;;  %v742_v46 = vld [vmem:[#allocation2 + $0x28] sm:$0xff] }
 0xf8b   :  { %v739_v44 = vld [vmem:[#allocation2 + $0x10] sm:$0xff]  ;;  %v747_v47 = vpack.c.bf16 %v742_v46, %v741_v45 }
 0xf8c   :  { %v746_v41 = vpack.c.bf16 %v740_v1, %v739_v44 }
 0xf8e   :  { %1052 = vmatmul.mubr.msk.bf16.vlgmr.msra.gmra.mrb[16].mxu0 %vm100_vm0, %v746_v41 }
 0xf8f   :  { %1055 = vmatprep.mubr.msk.bf16.mxu0 %vm100_vm0, %v747_v47 }
 0xf96   :  { %1056 = vmatmul.mubr.msk.bf16.gmra.mrb[20].mxu0 %vm100_vm0, %v748_v50 }
0x1061   :  { %v1053_v59 = vpop.f32.mrb[16].mxu0 }
0x1062   :  { %v834_v60 = vpop.f32.mrb[17].mxu0  ;;  %v843_v9 = vadd.f32 %v1053_v59, %v1016_v52 }
0x1063   :  { %v835_v61 = vadd.f32 %v1016_v52, %v834_v60  ;;  %v1054_v62 = vpop.f32.mrb[18].mxu0 }
0x1064   :  { %v837_v63 = vpop.f32.mrb[19].mxu0  ;;  %v846_v11 = vadd.f32 %v1054_v62, %v1016_v52 }
0x1065   :  { %v838_v10 = vadd.f32 %v1016_v52, %v837_v63  ;;  %1198 = vtanh.f32 %v835_v61 }
0x1067   :  { %1200 = vtanh.f32 %v838_v10 }
0x1068   :  { %1202 = vtanh.f32 %v843_v9 }
0x1069   :  { %v1057_v12 = vpop.f32.mrb[20].mxu0  ;;  %1204 = vtanh.f32 %v846_v11 }
0x106a   :  { %v850_v13 = vpop.f32.mrb[21].mxu0  ;;  %v859_v31 = vadd.f32 %v1057_v12, %v1016_v52 }
0x106b   :  { %v851_v14 = vadd.f32 %v1016_v52, %v850_v13  ;;  %v1058_v15 = vpop.f32.mrb[22].mxu0 }
0x106c   :  { %v853_v16 = vpop.f32.mrb[23].mxu0  ;;  %v862_v17 = vadd.f32 %v1058_v15, %v1016_v52 }
0x106d   :  { %1206 = vtanh.f32 %v851_v14  ;;  %v854_v26 = vadd.f32 %v1016_v52, %v853_v16 }
0x106f   :  { %1208 = vtanh.f32 %v854_v26  ;;  %v1199_v18 = vpop.eup %1198 }
0x1070   :  { %1210 = vtanh.f32 %v859_v31 }
0x1071   :  { %v1201_v19 = vpop.eup %1200  ;;  %1212 = vtanh.f32 %v862_v17 }
0x1072   :  { %v873_v20 = vadd.f32 %v1201_v19, %v1199_v18  ;;  %v1203_v21 = vpop.eup %1202 }
0x1073   :  { %v1205_v23 = vpop.eup %1204 }
0x1074   :  { %v874_v22 = vadd.f32 %v1203_v21, %v873_v20 }
0x1076   :  { %v875_v24 = vadd.f32 %v1205_v23, %v874_v22 }
0x1077   :  { %v1207_v25 = vpop.eup %1206 }
0x1078   :  { %v876_v27 = vadd.f32 %v1207_v25, %v875_v24 }
0x1079   :  { %v1209_v28 = vpop.eup %1208 }
0x107a   :  { %v877_v29 = vadd.f32 %v1209_v28, %v876_v27  ;;  %v1211_v30 = vpop.eup %1210 }
0x107b   :  { %v1213_v32 = vpop.eup %1212 }
0x107c   :  { %v878_v2 = vadd.f32 %v1211_v30, %v877_v29 }
0x107e   :  { %v879_v0 = vadd.f32 %v1213_v32, %v878_v2 }
0x1080   :  { %v880_v3 = vmul.f32 0.125, %v879_v0 }
0x1082   :  { %v881_v33 = vpack.c.bf16 %v880_v3, %v880_v3 }
0x1084   :  { %1068 = vmatmul.mubr.msk.bf16.vlgmr.msra.gmra.mrb[16].mxu1 %vm100_vm0, %v881_v33 }
0x1157   :  { %v954_v5 = vpop.f32.mrb[16].mxu1 }
0x1158   :  { %v955_v56 = vadd.f32 %v954_v5, %v915_v4  ;;  %v1069_v6 = vpop.f32.mrb[17].mxu1 }
0x1159   :  { %v957_v51 = vpop.f32.mrb[18].mxu1 }
0x115a   :  { %v1070_v34 = vpop.f32.mrb[19].mxu1  ;;  %v960_v7 = vmul.f32 %v955_v56, %v955_v56 }
0x115c   :  { %v962_v8 = vsel %vm961_vm4, %v960_v7, 0.0 }
0x115d   :  { %963 = vadd.xlane.f32.xlu0 %v962_v8 }
0x11ea   :  { %v964_v35 = vpop.xlane.xlu0 %963 }
0x11eb   :  { %v965_v36 = vmax.f32 %v964_v35, 1e-24 }
0x11ed   :  { %1214 = vrsqrt.f32 %v965_v36 }
0x11f7   :  { %v1215_v37 = vpop.eup %1214 }
0x11f8   :  { %v967_v38 = vmul.f32 %v1215_v37, %v955_v56 }
0x11fa   :  { %968 = vst.msk [vmem:[#allocation8] sm:$0xff] %vm961_vm4, %v967_v38 }
0x11fb   :  { %1271 = shalt.err (!%p1268_p6)
}
0x11fc   :  { %s1272_s15 = scalar_lea.hbm %s1568_s5, 128 }
0x11fd   :  { %p1273_p7 = scmp.ne.s32.totalorder %s1568_s5, %s1272_s15  ;;  %p1276_p8 = scmp.lt.u32.totalorder %s1272_s15, %s1568_s5 }
0x11ff   :  { %p1278_p9 = pnand %p1276_p8, %p1273_p7 }
0x1201   :  { %1281 = shalt.err (!%p1278_p9)
}
0x1202   :  { %978 = dma.vmem_to_hbm [thread:$0]  %s976_s11, 128, %s1568_s5, [#allocation5]  }
0x1203   :  { %1286 = dma.done.wait [#allocation5], 128  }
0x1204   :  { %1287 = vsyncadd [#allocation5], 4294967168 }
0x1205   :  { %982 = vsyncpa [#allocation4], 1 }
0x1206   :  { %983 = vsyncpa [#allocation7], 1 }
0x1207   :  { %984 = vsyncpa [#allocation5], 1 }

</bundles_post_ra>
